<compile_context>
chip_gen: v6e
topology: v6e:2x2x1
jax: 0.10.0
libtpu: 0.0.40
codegen_flags: <defaults>
</compile_context>

<pallas_src>
import functools
import math

import jax
import jax.numpy as jnp
from jax.experimental import pallas as pl
from jax.experimental.pallas import tpu as pltpu

_PAD_VALUE = -1e9  # << any cosine; exp(scale*(pad - max)) underflows to 0.


def _arcface_kernel(logits_ref, labels_ref, loss_ref,
                    m_ref, l_ref, coslab_ref, *,
                    scale, cos_m, sin_m, th, mm, block_c):
    j = pl.program_id(1)

    @pl.when(j == 0)
    def _init():
        m_ref[...] = jnp.full_like(m_ref, -jnp.inf)
        l_ref[...] = jnp.zeros_like(l_ref)
        coslab_ref[...] = jnp.zeros_like(coslab_ref)

    cosine = logits_ref[...].astype(jnp.float32)            # (tB, tC)

    # Label mask: fold the tile offset into the (tB, 1) labels side so the
    # iota stays (1, tC) and the compare broadcasts (saves full-tile VPU ops).
    lab_local = labels_ref[...] - j * block_c                # (tB, 1) int32
    col = jax.lax.broadcasted_iota(jnp.int32, (1, cosine.shape[1]), 1)
    hit = col == lab_local                                   # (tB, tC)

    # Online logsumexp over scale*cosine, EXCLUDING the label column.
    # Running max is kept in cosine units; scale is applied inside the exps.
    m_prev = m_ref[...]                                      # (tB, 1)
    m_new = jnp.maximum(m_prev, jnp.max(cosine, axis=1, keepdims=True))
    alpha = jnp.exp((m_prev - m_new) * scale)
    e = jnp.where(hit, 0.0, jnp.exp((cosine - m_new) * scale))
    l_ref[...] = alpha * l_ref[...] + jnp.sum(e, axis=1, keepdims=True)
    m_ref[...] = m_new

    # Gather cosine[label] for rows whose label falls inside this class tile.
    coslab_ref[...] += jnp.sum(jnp.where(hit, cosine, 0.0), axis=1,
                               keepdims=True)

    @pl.when(j == pl.num_programs(1) - 1)
    def _finalize():
        cos_t = coslab_ref[...]                              # (tB, 1)
        sine_t = jnp.sqrt(jnp.clip(1.0 - cos_t * cos_t, 0.0, 1.0))
        phi_t = cos_t * cos_m - sine_t * sin_m
        phi_t = jnp.where(cos_t > th, phi_t, cos_t - mm)
        target = scale * phi_t                               # (tB, 1)
        m_fin = m_ref[...] * scale
        # phi <= cosine[label] <= max(cosine) so target - m_fin <= 0: stable.
        l_tot = l_ref[...] + jnp.exp(target - m_fin)
        lse = m_fin + jnp.log(l_tot)
        loss_ref[...] = (lse - target).astype(loss_ref.dtype)


def _pick_tile(dim, target, quantum):
    """Largest multiple of `quantum` that divides `dim` and is <= target,
    falling back to the full dim (always a legal block size)."""
    if dim <= target:
        return dim
    best = None
    t = quantum
    while t <= target:
        if dim % t == 0:
            best = t
        t += quantum
    return best if best is not None else dim


def _chip_kind():
    try:
        return jax.devices()[0].device_kind.lower()
    except Exception:
        return ""


def arcface_loss(logits, labels, scale=30.0, margin=0.5, *,
                 block_b=None, block_c=None):
    """ArcFace loss. logits: (B, C) cosine similarities, labels: (B,) int.
    Labels are assumed to be valid class indices in [0, C)."""
    B, C = logits.shape
    cos_m = math.cos(margin)
    sin_m = math.sin(margin)
    th = math.cos(math.pi - margin)
    mm = math.sin(math.pi - margin) * margin

    itemsize = jnp.dtype(logits.dtype).itemsize
    kind = _chip_kind()
    is_v7 = "v7" in kind

    # Pad C to a multiple of 128 so the tuned class tile is always legal.
    # Padded columns get a huge negative value: they never win the max
    # (real cosines exist in every tile since pad < 128 <= tC), their exp
    # underflows to exactly 0, and they never match a label.
    C_pad = ((C + 127) // 128) * 128
    if C_pad != C:
        logits = jnp.pad(logits, ((0, 0), (0, C_pad - C)),
                         constant_values=_PAD_VALUE)

    # dtype-aware sublane quantum for the batch tile (f32/bf16/int8 packing).
    b_quantum = {4: 8, 2: 16, 1: 32}.get(itemsize, 8)

    # Per-generation tile targets and VMEM budget.
    if is_v7:
        c_target = 2048 if itemsize >= 4 else 4096
        vmem_limit = 48 * 1024 * 1024          # 64 MiB/TC on v7x: leave headroom
        b_target = 256
        # Guarantee >= 2 batch blocks so ("parallel", ...) shards across TCs.
        if B >= 2 * b_quantum:
            b_target = min(b_target,
                           max(b_quantum, (B // 2) // b_quantum * b_quantum))
    else:
        c_target = 8192 if itemsize >= 4 else 16384
        vmem_limit = 96 * 1024 * 1024          # 128 MiB physical on v5e/v6e
        b_target = 256

    tB = block_b if block_b is not None else _pick_tile(B, b_target, b_quantum)
    tC = block_c if block_c is not None else _pick_tile(C_pad, c_target, 128)
    assert B % tB == 0 and C_pad % tC == 0, (B, C_pad, tB, tC)

    labels2d = labels.reshape(B, 1).astype(jnp.int32)

    kernel = functools.partial(
        _arcface_kernel,
        scale=float(scale), cos_m=cos_m, sin_m=sin_m, th=th, mm=mm,
        block_c=tC,
    )

    cost = pl.CostEstimate(
        flops=10 * B * C_pad,
        transcendentals=B * C_pad,
        bytes_accessed=B * C_pad * itemsize + 2 * B * 4 + B * 4,
    )

    per_row = pl.pallas_call(
        kernel,
        out_shape=jax.ShapeDtypeStruct((B, 1), jnp.float32),
        grid_spec=pltpu.PrefetchScalarGridSpec(
            num_scalar_prefetch=0,
            grid=(B // tB, C_pad // tC),        # class (reduction) axis last
            in_specs=[
                # Logits tile; sweep pipeline_mode=pl.Buffered(3) here only if
                # xprof shows exposed DMA at tile boundaries.
                pl.BlockSpec((tB, tC), lambda i, j: (i, j)),
                pl.BlockSpec((tB, 1), lambda i, j: (i, 0)),    # labels per row
            ],
            out_specs=pl.BlockSpec((tB, 1), lambda i, j: (i, 0)),
            scratch_shapes=[
                pltpu.VMEM((tB, 1), jnp.float32),   # running max (cosine units)
                pltpu.VMEM((tB, 1), jnp.float32),   # running sum (label excluded)
                pltpu.VMEM((tB, 1), jnp.float32),   # gathered cosine[label]
            ],
        ),
        compiler_params=pltpu.CompilerParams(
            dimension_semantics=("parallel", "arbitrary"),
            vmem_limit_bytes=vmem_limit,
        ),
        cost_estimate=cost,
    )(logits, labels2d)

    # TODO(synk): if callers use padded rows (label == -1 or >= C), mask them
    # out of this mean in the wrapper; the reference cross_entropy ignores them.
    return jnp.mean(per_row)


def _reference_loss(logits, labels, scale=30.0, margin=0.5):
    """Pure-JAX reference mirroring the PyTorch module."""
    cos_m = math.cos(margin)
    sin_m = math.sin(margin)
    th = math.cos(math.pi - margin)
    mm = math.sin(math.pi - margin) * margin
    cosine = logits.astype(jnp.float32)
    sine = jnp.sqrt(jnp.clip(1.0 - cosine ** 2, 0.0, 1.0))
    phi = cosine * cos_m - sine * sin_m
    phi = jnp.where(cosine > th, phi, cosine - mm)
    one_hot = jax.nn.one_hot(labels, logits.shape[1], dtype=jnp.float32)
    output = (one_hot * phi + (1.0 - one_hot) * cosine) * scale
    logprobs = jax.nn.log_softmax(output, axis=1)
    return -jnp.mean(jnp.sum(one_hot * logprobs, axis=1))


if __name__ == "__main__":
    # Small shapes; C=500 is NOT a multiple of 128, exercising the class
    # padding path, and the forced tiles exercise a 2x4 grid (init/accumulate/
    # finalize across class tiles, multiple batch blocks).
    B, C = 16, 500
    scale, margin = 30.0, 0.5

    key = jax.random.PRNGKey(0)
    k1, k2 = jax.random.split(key)
    logits = jax.random.uniform(k1, (B, C), dtype=jnp.float32,
                                minval=-1.0, maxval=1.0)   # "cosine" logits
    labels = jax.random.randint(k2, (B,), 0, C, dtype=jnp.int32)

    loss = arcface_loss(logits, labels, scale=scale, margin=margin,
                        block_b=8, block_c=128)
    jax.block_until_ready(loss)

    ref = _reference_loss(logits, labels, scale=scale, margin=margin)
    assert jnp.allclose(loss, ref, rtol=1e-4, atol=1e-4), (loss, ref)

    # Also check the auto-tiling path (chip-aware tile/VMEM selection).
    loss2 = arcface_loss(logits, labels, scale=scale, margin=margin)
    jax.block_until_ready(loss2)
    assert jnp.allclose(loss2, ref, rtol=1e-4, atol=1e-4), (loss2, ref)

    print("KERNEL_OK")
</pallas_src>

<mosaic_0001>
module attributes {stable_mosaic.version = 11 : i64} {
  func.func @_arcface_kernel(%arg0: i32, %arg1: i32, %arg2: memref<8x128xf32, #tpu.memory_space<vmem>>, %arg3: memref<8x1xi32, #tpu.memory_space<vmem>>, %arg4: memref<8x1xf32, #tpu.memory_space<vmem>>, %arg5: memref<8x1xf32, #tpu.memory_space<vmem>>, %arg6: memref<8x1xf32, #tpu.memory_space<vmem>>, %arg7: memref<8x1xf32, #tpu.memory_space<vmem>>) attributes {dimension_semantics = [#tpu.dimension_semantics<parallel>, #tpu.dimension_semantics<arbitrary>], iteration_bounds = array<i64: 2, 4>, scalar_prefetch = 0 : i64, scratch_operands = 3 : i64, tpu.core_type = #tpu.core_type<tc>, window_params = [{transform_indices = @transform_0, window_bounds = array<i64: 8, 128>}, {transform_indices = @transform_1, window_bounds = array<i64: 8, 1>}, {transform_indices = @transform_2, window_bounds = array<i64: 8, 1>}]} {
    %c0_i32 = arith.constant 0 : i32
    %0 = arith.cmpi eq, %arg1, %c0_i32 : i32
    %1 = arith.extui %0 : i1 to i32
    %c0_i32_0 = arith.constant 0 : i32
    %2 = arith.cmpi ne, %1, %c0_i32_0 : i32
    scf.if %2 {
      %cst_23 = arith.constant 0xFF800000 : f32
      %44 = vector.broadcast %cst_23 : f32 to vector<8x1xf32>
      %c0_24 = arith.constant 0 : index
      %c0_25 = arith.constant 0 : index
      %45 = vector.load %arg5[%c0_24, %c0_25] : memref<8x1xf32, #tpu.memory_space<vmem>>, vector<8x1xf32>
      tpu.vector_store %arg5[%c0_24, %c0_25], %44 {strides = array<i32>} : memref<8x1xf32, #tpu.memory_space<vmem>>, vector<8x1xf32>,
      %cst_26 = arith.constant 0.000000e+00 : f32
      %46 = vector.broadcast %cst_26 : f32 to vector<8x1xf32>
      %c0_27 = arith.constant 0 : index
      %c0_28 = arith.constant 0 : index
      %47 = vector.load %arg6[%c0_27, %c0_28] : memref<8x1xf32, #tpu.memory_space<vmem>>, vector<8x1xf32>
      tpu.vector_store %arg6[%c0_27, %c0_28], %46 {strides = array<i32>} : memref<8x1xf32, #tpu.memory_space<vmem>>, vector<8x1xf32>,
      %cst_29 = arith.constant 0.000000e+00 : f32
      %48 = vector.broadcast %cst_29 : f32 to vector<8x1xf32>
      %c0_30 = arith.constant 0 : index
      %c0_31 = arith.constant 0 : index
      %49 = vector.load %arg7[%c0_30, %c0_31] : memref<8x1xf32, #tpu.memory_space<vmem>>, vector<8x1xf32>
      tpu.vector_store %arg7[%c0_30, %c0_31], %48 {strides = array<i32>} : memref<8x1xf32, #tpu.memory_space<vmem>>, vector<8x1xf32>,
    } else {
    }
    %c0 = arith.constant 0 : index
    %c0_1 = arith.constant 0 : index
    %3 = vector.load %arg2[%c0, %c0_1] : memref<8x128xf32, #tpu.memory_space<vmem>>, vector<8x128xf32>
    %c0_2 = arith.constant 0 : index
    %c0_3 = arith.constant 0 : index
    %4 = vector.load %arg3[%c0_2, %c0_3] : memref<8x1xi32, #tpu.memory_space<vmem>>, vector<8x1xi32>
    %c128_i32 = arith.constant 128 : i32
    %5 = arith.muli %arg1, %c128_i32 : i32
    %6 = vector.broadcast %5 : i32 to vector<8x1xi32>
    %7 = arith.subi %4, %6 : vector<8x1xi32>
    %8 = tpu.iota {dimensions = array<i32: 1>} : vector<1x128xi32>
    %9 = vector.broadcast %8 : vector<1x128xi32> to vector<8x128xi32>
    %10 = vector.broadcast %7 : vector<8x1xi32> to vector<8x128xi32>
    %11 = arith.cmpi eq, %9, %10 : vector<8x128xi32>
    %c0_4 = arith.constant 0 : index
    %c0_5 = arith.constant 0 : index
    %12 = vector.load %arg5[%c0_4, %c0_5] : memref<8x1xf32, #tpu.memory_space<vmem>>, vector<8x1xf32>
    %cst = arith.constant dense<0xFF800000> : vector<8xf32>
    %13 = vector.multi_reduction <maximumf>, %3, %cst [1] : vector<8x128xf32> to vector<8xf32>
    %14 = vector.shape_cast %13 : vector<8xf32> to vector<8x1xf32>
    %15 = arith.maximumf %12, %14 : vector<8x1xf32>
    %16 = arith.subf %12, %15 : vector<8x1xf32>
    %cst_6 = arith.constant 3.000000e+01 : f32
    %17 = vector.broadcast %cst_6 : f32 to vector<8x1xf32>
    %18 = arith.mulf %16, %17 : vector<8x1xf32>
    %19 = math.exp %18 : vector<8x1xf32>
    %20 = vector.broadcast %15 : vector<8x1xf32> to vector<8x128xf32>
    %21 = arith.subf %3, %20 : vector<8x128xf32>
    %cst_7 = arith.constant 3.000000e+01 : f32
    %22 = vector.broadcast %cst_7 : f32 to vector<8x128xf32>
    %23 = arith.mulf %21, %22 : vector<8x128xf32>
    %24 = math.exp %23 : vector<8x128xf32>
    %cst_8 = arith.constant 0.000000e+00 : f32
    %25 = vector.broadcast %cst_8 : f32 to vector<8x128xf32>
    %26 = arith.select %11, %25, %24 : vector<8x128xi1>, vector<8x128xf32>
    %c0_9 = arith.constant 0 : index
    %c0_10 = arith.constant 0 : index
    %27 = vector.load %arg6[%c0_9, %c0_10] : memref<8x1xf32, #tpu.memory_space<vmem>>, vector<8x1xf32>
    %28 = arith.mulf %19, %27 : vector<8x1xf32>
    %cst_11 = arith.constant dense<0.000000e+00> : vector<8xf32>
    %29 = vector.multi_reduction <add>, %26, %cst_11 [1] : vector<8x128xf32> to vector<8xf32>
    %30 = vector.shape_cast %29 : vector<8xf32> to vector<8x1xf32>
    %31 = arith.addf %28, %30 : vector<8x1xf32>
    %c0_12 = arith.constant 0 : index
    %c0_13 = arith.constant 0 : index
    %32 = vector.load %arg6[%c0_12, %c0_13] : memref<8x1xf32, #tpu.memory_space<vmem>>, vector<8x1xf32>
    tpu.vector_store %arg6[%c0_12, %c0_13], %31 {strides = array<i32>} : memref<8x1xf32, #tpu.memory_space<vmem>>, vector<8x1xf32>,
    %c0_14 = arith.constant 0 : index
    %c0_15 = arith.constant 0 : index
    %33 = vector.load %arg5[%c0_14, %c0_15] : memref<8x1xf32, #tpu.memory_space<vmem>>, vector<8x1xf32>
    tpu.vector_store %arg5[%c0_14, %c0_15], %15 {strides = array<i32>} : memref<8x1xf32, #tpu.memory_space<vmem>>, vector<8x1xf32>,
    %c0_16 = arith.constant 0 : index
    %c0_17 = arith.constant 0 : index
    %34 = vector.load %arg7[%c0_16, %c0_17] : memref<8x1xf32, #tpu.memory_space<vmem>>, vector<8x1xf32>
    %cst_18 = arith.constant 0.000000e+00 : f32
    %35 = vector.broadcast %cst_18 : f32 to vector<8x128xf32>
    %36 = arith.select %11, %3, %35 : vector<8x128xi1>, vector<8x128xf32>
    %cst_19 = arith.constant dense<0.000000e+00> : vector<8xf32>
    %37 = vector.multi_reduction <add>, %36, %cst_19 [1] : vector<8x128xf32> to vector<8xf32>
    %38 = vector.shape_cast %37 : vector<8xf32> to vector<8x1xf32>
    %39 = arith.addf %34, %38 : vector<8x1xf32>
    %c0_20 = arith.constant 0 : index
    %c0_21 = arith.constant 0 : index
    %40 = vector.load %arg7[%c0_20, %c0_21] : memref<8x1xf32, #tpu.memory_space<vmem>>, vector<8x1xf32>
    tpu.vector_store %arg7[%c0_20, %c0_21], %39 {strides = array<i32>} : memref<8x1xf32, #tpu.memory_space<vmem>>, vector<8x1xf32>,
    %c3_i32 = arith.constant 3 : i32
    %41 = arith.cmpi eq, %arg1, %c3_i32 : i32
    %42 = arith.extui %41 : i1 to i32
    %c0_i32_22 = arith.constant 0 : i32
    %43 = arith.cmpi ne, %42, %c0_i32_22 : i32
    scf.if %43 {
      %c0_23 = arith.constant 0 : index
      %c0_24 = arith.constant 0 : index
      %44 = vector.load %arg7[%c0_23, %c0_24] : memref<8x1xf32, #tpu.memory_space<vmem>>, vector<8x1xf32>
      %45 = arith.mulf %44, %44 : vector<8x1xf32>
      %cst_25 = arith.constant 1.000000e+00 : f32
      %46 = vector.broadcast %cst_25 : f32 to vector<8x1xf32>
      %47 = arith.subf %46, %45 : vector<8x1xf32>
      %cst_26 = arith.constant 0.000000e+00 : f32
      %cst_27 = arith.constant 1.000000e+00 : f32
      %48 = vector.broadcast %cst_26 : f32 to vector<8x1xf32>
      %49 = arith.maximumf %48, %47 : vector<8x1xf32>
      %50 = vector.broadcast %cst_27 : f32 to vector<8x1xf32>
      %51 = arith.minimumf %50, %49 : vector<8x1xf32>
      %52 = math.sqrt %51 : vector<8x1xf32>
      %cst_28 = arith.constant 0.87758255 : f32
      %53 = vector.broadcast %cst_28 : f32 to vector<8x1xf32>
      %54 = arith.mulf %44, %53 : vector<8x1xf32>
      %cst_29 = arith.constant 0.47942555 : f32
      %55 = vector.broadcast %cst_29 : f32 to vector<8x1xf32>
      %56 = arith.mulf %52, %55 : vector<8x1xf32>
      %57 = arith.subf %54, %56 : vector<8x1xf32>
      %cst_30 = arith.constant -0.87758255 : f32
      %58 = vector.broadcast %cst_30 : f32 to vector<8x1xf32>
      %59 = arith.cmpf ogt, %44, %58 : vector<8x1xf32>
      %cst_31 = arith.constant 0.239712775 : f32
      %60 = vector.broadcast %cst_31 : f32 to vector<8x1xf32>
      %61 = arith.subf %44, %60 : vector<8x1xf32>
      %62 = arith.select %59, %57, %61 : vector<8x1xi1>, vector<8x1xf32>
      %cst_32 = arith.constant 3.000000e+01 : f32
      %63 = vector.broadcast %cst_32 : f32 to vector<8x1xf32>
      %64 = arith.mulf %63, %62 : vector<8x1xf32>
      %c0_33 = arith.constant 0 : index
      %c0_34 = arith.constant 0 : index
      %65 = vector.load %arg5[%c0_33, %c0_34] : memref<8x1xf32, #tpu.memory_space<vmem>>, vector<8x1xf32>
      %cst_35 = arith.constant 3.000000e+01 : f32
      %66 = vector.broadcast %cst_35 : f32 to vector<8x1xf32>
      %67 = arith.mulf %65, %66 : vector<8x1xf32>
      %c0_36 = arith.constant 0 : index
      %c0_37 = arith.constant 0 : index
      %68 = vector.load %arg6[%c0_36, %c0_37] : memref<8x1xf32, #tpu.memory_space<vmem>>, vector<8x1xf32>
      %69 = arith.subf %64, %67 : vector<8x1xf32>
      %70 = math.exp %69 : vector<8x1xf32>
      %71 = arith.addf %68, %70 : vector<8x1xf32>
      %72 = math.log %71 : vector<8x1xf32>
      %73 = arith.addf %67, %72 : vector<8x1xf32>
      %74 = arith.subf %73, %64 : vector<8x1xf32>
      %c0_38 = arith.constant 0 : index
      %c0_39 = arith.constant 0 : index
      %75 = vector.load %arg4[%c0_38, %c0_39] : memref<8x1xf32, #tpu.memory_space<vmem>>, vector<8x1xf32>
      tpu.vector_store %arg4[%c0_38, %c0_39], %74 {strides = array<i32>} : memref<8x1xf32, #tpu.memory_space<vmem>>, vector<8x1xf32>,
    } else {
    }
    return
  }
  func.func @transform_0(%arg0: i32, %arg1: i32) -> (i32, i32) {
    %c0_i32 = arith.constant 0 : i32
    return %arg0, %arg1 : i32, i32
  }
  func.func @transform_1(%arg0: i32, %arg1: i32) -> (i32, i32) {
    %c0_i32 = arith.constant 0 : i32
    %c0_i32_0 = arith.constant 0 : i32
    return %arg0, %c0_i32 : i32, i32
  }
  func.func @transform_2(%arg0: i32, %arg1: i32) -> (i32, i32) {
    %c0_i32 = arith.constant 0 : i32
    %c0_i32_0 = arith.constant 0 : i32
    return %arg0, %c0_i32 : i32, i32
  }
}

</mosaic_0001>

<bundles_post_ra>
// kernel: tpu_custom_call.1
= control target key start
LH: loop header
LB: loop body
LE: loop exit
PB: predicated region body
PF: predicated region fallthrough
CT: control target
= control target key end

     0   :  { %7 = vsyncpa [#allocation6], 0  ;;  %s724_s0 = inlined_call_operand.hbm [shape: f32[16,512], index: 0, kind: input, shape index: {}]   ;;  %s725_s1 = inlined_call_operand.vmem [shape: s32[16,1], index: 1, kind: input, shape index: {}]   ;;  %s726_s2 = inlined_call_operand.vmem [shape: f32[16,1], index: 2, kind: output, shape index: {}]  }
   0x1   :  { %9 = vsyncpa [#allocation6 + $0x1], 0  ;;  %s586_s9 = smov 0   ;;  %s588_s10 = smov 0  }
   0x2   :  { %s590_s11 = smov 0   ;;  %s592_s12 = smov 0  }
   0x3   :  { %s594_s13 = smov 0   ;;  %s596_s14 = smov 0  }
   0x4   :  { %s598_s15 = smov 0   ;;  %s600_s16 = smov 0  }
   0x5 LB: > { %s368_s17 = sadd.s32 4294967295, %s565_s16   ;;  %s24_s18 = sadd.s32 1, %s557_s14  ;;  %s565_s16 = sphi %s600_s16, %s15_s16   ;;  %s561_s15 = sphi %s598_s15, %s736_s15   ;;  %s557_s14 = sphi %s596_s14, %s735_s14   ;;  %s553_s13 = sphi %s594_s13, %s734_s13   ;;  %s549_s12 = sphi %s592_s12, %s733_s12   ;;  %s545_s11 = sphi %s590_s11, %s732_s11   ;;  %s541_s10 = sphi %s588_s10, %s731_s10   ;;  %s537_s9 = sphi %s586_s9, %s730_s9  }
   0x6   : > { %p25_p0 = scmp.ge.s32.totalorder %s24_s18, 4  ;;  %s27_s19 = sadd.s32 1, %s561_s15 }
   0x7   : > { %s36_s20 = sadd.s32 1, %s545_s11  ;;  %p43_p1 = scmp.ne.s32.totalorder %s545_s11, %s541_s10 }
   0x8   : > { %s738_s18 = smov (%p25_p0, %s24_s18), 0  ;;  %s740_s19 = smov (!%p25_p0, %s27_s19), %s561_s15 }
   0x9   : > { %s32_s21 = ssub.s32 %s557_s14, %s738_s18  ;;  %p44_p2 = scmp.eq.s32.totalorder %s565_s16, 0 }
   0xa   : > { %p29_p3 = scmp.ge.s32.totalorder %s740_s19, 2  ;;  %p49_p4 = scmp.ne.s32.totalorder %s541_s10, %s537_s9 }
   0xb   : > { %p637_p5 = por %p44_p2, %p43_p1  ;;  %p50_p6 = scmp.eq.s32.totalorder %s368_s17, 0 }
   0xc   : > { %s742_s19 = smov (%p29_p3, %s740_s19), 0  ;;  %p391_p8 = scmp.lt.s32.totalorder %s565_s16, 8 }
   0xd   : > { %p643_p7 = por %p50_p6, %p49_p4  ;;  %s31_s24 = ssub.s32 %s561_s15, %s742_s19 }
   0xe   : > { %s33_s25 = sor.u32 %s32_s21, %s31_s24  ;;  %s125_s26 = sand.u32 1, %s545_s11  }
   0xf   : > { %p34_p9 = scmp.eq.s32.totalorder %s33_s25, 0  ;;  %s372_s27 = sshll.u32 %s125_s26, 3 }
  0x10   : > { %s373_s28 = sshll.u32 %s561_s15, 2  ;;  %s129_s4 = scalar_lea.vmem [#allocation5], %s372_s27 }
  0x11   : > { %s653_s29 = scalar_select %p34_p9, %s545_s11, %s36_s20  }
  0x12   : > { %s134_s30 = sadd.s32 %s557_s14, %s373_s28  ;;  %s138_s5 = sshll.u32 %s129_s4, 4  ;;  %s139_s5 = int_to_ptr.vmem [resolvable:$true] %s138_s5 }
  0x13   : > { %s374_s3 = sshll.u32 %s134_s30, 7  ;;  %p663_p10 = pnand %p391_p8, %p637_p5 }
  0x14   : > { %s136_s8 = scalar_lea.hbm %s724_s0, %s374_s3  ;;  %p375_p11 = scmp.ge.s32.totalorder %s565_s16, 1 }
  0x15   : > { %p150_p12 = scmp.lt.s32.totalorder %s565_s16, 9  ;;  %s126_s17 = scalar_lea.sflag [#allocation6], %s125_s26 }
  0x16   : > { %p473_p13 = pneg %p663_p10  ;;  %s484_s20 = scalar_lea.vmem %s139_s5, 128 }
  0x17   : > { %p485_p0 = scmp.ne.s32.totalorder %s139_s5, %s484_s20  ;;  %s567_s21 = smov [#allocation5]  }
  0x18   : > { %s489_s24 = sshll.u32 %s567_s21, 4  ;;  %s490_s24 = int_to_ptr.vmem [resolvable:$false] %s489_s24 }
  0x19   : > { %p487_p1 = pnand %p485_p0, %p473_p13  ;;  %s491_s25 = scalar_lea.vmem %s490_s24, 256 }
  0x1a   : > { %p492_p3 = scmp.lt.s32.totalorder %s139_s5, %s490_s24  ;;  %p493_p4 = scmp.lt.s32.totalorder %s491_s25, %s484_s20 }
  0x1b   : > { %p488_p2 = pneg %p487_p1 }
  0x1c   : > { %p494_p5 = por %p493_p4, %p492_p3 }
  0x1e   : > { %p495_p6 = pnand %p494_p5, %p488_p2 }
  0x20   : > { %498 = shalt.err (!%p495_p6)
}
  0x21   : > { %390 = dma.hbm_to_vmem [thread:$0]  (!%p663_p10), %s136_s8, 128, %s139_s5, %s126_s17  }
  0x22   : > { %p151_p8 = pnand %p375_p11, %p150_p12 }
  0x23   : > { %s156_s22 = sand.u32 (!%p151_p8), 1, %s541_s10  }
  0x24   : > { %154 = sbr.rel (%p151_p8) target bundleno = 564 (0x234), region = 28  ;;  %s376_s26 = sshll.u32 (!%p151_p8), %s156_s22, 3 }
  0x25   : > { %s157_s27 = scalar_lea.sflag (!%p151_p8), [#allocation6], %s156_s22  ;;  %s160_s28 = scalar_lea.vmem (!%p151_p8), [#allocation5], %s376_s26 }
  0x29   : > { %532 = dma.done.wait (%p643_p7), %s157_s27, 128  }
  0x2a   : > { %534 = vsyncadd (%p643_p7), %s157_s27, 4294967168  ;;  %p184_p9 = scmp.lt.s32.totalorder %s553_s13, 1  ;;  %p379_p10 = scmp.ne.s32.totalorder %s549_s12, 0 }
  0x2c   : > { %s744_s13 = smov (!%p184_p9, %s553_s13), 1  ;;  %195 = sbr.rel (%p379_p10) target bundleno = 52 (0x34), region = 36 }
  0x2d   : > { %s377_s30 = sshll.u32 %s744_s13, 3 }
  0x2e   : > { %s187_s5 = scalar_lea.vmem %s725_s1, %s377_s30  ;;  %s690_s8 = scalar_lea.vmem %s726_s2, %s377_s30 }
  0x31   : > { %vm196_vm0 = vcmask 7168   ;;  %v568_v0 = vmov -inf   ;;  %v569_v1 = vmov 0.0  }
  0x32   : > { %197 = vst.msk [vmem:[#allocation2] sm:$0xff] %vm196_vm0, %v568_v0  ;;  %198 = vst.msk [vmem:[#allocation3] sm:$0xff] %vm196_vm0, %v569_v1 }
  0x33   : > { %199 = vst.msk [vmem:[#allocation4] sm:$0xff] %vm196_vm0, %v569_v1 }
  0x34 PF: > { %v200_v2 = vld [vmem:[%s160_s28] sm:$0xff]  ;;  %v570_v3 = vmov 0   ;;  %s380_s13 = sshll.u32 %s549_s12, 7  ;;  %vm234_vm1 = vcmask 7168   ;;  %v205_v15 = vlaneseq  ;;  %p381_p7 = scmp.ne.s32.totalorder %s549_s12, 3 }
  0x35   : > { %212 = vmax.xlane.f32.xlu0 %v200_v2  ;;  %460 = vset.pattern.permute.xlu1 %v570_v3  ;;  %v201_v4 = vld [vmem:[%s187_s5] sm:$0xff]  ;;  %v203_v5 = vstv %s380_s13 }
  0x36   : > { %459 = vset.pattern.permute.xlu0 %v570_v3  ;;  %v204_v6 = vsub.s32 %v201_v4, %v203_v5  ;;  %v206_v16 = vand.u32 127, %v205_v15 }
  0x38   : > { %208 = vperm.xlu1 %460, %v204_v6  }
  0x39   : > { %v211_v7 = vld [vmem:[#allocation2] sm:$0xff]  ;;  %v229_v24 = vld [vmem:[#allocation3] sm:$0xff] }
  0x3a   : > { %v237_v28 = vld [vmem:[#allocation4] sm:$0xff] }
  0xb3   : > { %v209_v17 = vpop.permute.xlu1 %208 }
  0xb4   : > { %vm210_vm2 = vcmp.eq.s32.totalorder %v206_v16, %v209_v17 }
  0xb5   : > { %v238_v20 = vsel %vm210_vm2, %v200_v2, 0.0 }
  0xbe   : > { %v213_v8 = vpop.xlane.xlu0 %212 }
  0xbf   : > { %v214_v9 = vmax.f32 %v211_v7, %v213_v8 }
  0xc1   : > { %v215_v10 = vsub.f32 %v211_v7, %v214_v9  ;;  %236 = vst.msk [vmem:[#allocation2] sm:$0xff] %vm234_vm1, %v214_v9  ;;  %221 = vperm.xlu0 %459, %v214_v9  }
  0xc3   : > { %v216_v21 = vmul.f32 30.0, %v215_v10 }
  0xc5   : > { %v217_v22 = vmul.f32 1.442695, %v216_v21 }
 0x13c   : > { %v222_v11 = vpop.permute.xlu0 %221 }
 0x13d   : > { %v224_v12 = vsub.f32 %v200_v2, %v222_v11 }
 0x13f   : > { %v225_v13 = vmul.f32 30.0, %v224_v12 }
 0x141   : > { %v226_v14 = vmul.f32 1.442695, %v225_v13 }
 0x143   : > { %461 = vpow2.f32 %v226_v14 }
 0x144   : > { %463 = vpow2.f32 %v217_v22 }
 0x150   : > { %v462_v18 = vpop.eup %461 }
 0x151   : > { %v228_v19 = vsel %vm210_vm2, 0.0, %v462_v18  ;;  %v464_v23 = vpop.eup %463 }
 0x152   : > { %231 = vadd.xlane.f32.xlu1 %v228_v19  ;;  %v230_v25 = vmul.f32 %v464_v23, %v229_v24 }
 0x156   : > { %239 = vadd.xlane.f32.xlu1 %v238_v20 }
 0x1db   : > { %v232_v26 = vpop.xlane.xlu1 %231 }
 0x1dc   : > { %v233_v27 = vadd.f32 %v232_v26, %v230_v25 }
 0x1de   : > { %235 = vst.msk [vmem:[#allocation3] sm:$0xff] %vm234_vm1, %v233_v27  ;;  %246 = sbr.rel (%p381_p7) target bundleno = 564 (0x234), region = 40 }
 0x1df   : > { %v240_v29 = vpop.xlane.xlu1 %239 }
 0x1e0   : > { %v241_v30 = vadd.f32 %v240_v29, %v237_v28 }
 0x1e2   : > { %242 = vst.msk [vmem:[#allocation4] sm:$0xff] %vm234_vm1, %v241_v30 }
 0x1e3   : > { %v266_v44 = vld [vmem:[#allocation2] sm:$0xff] }
 0x1e4   : > { %v267_v46 = vmul.f32 30.0, %v266_v44 }
 0x1e5   : > { %v268_v51 = vld [vmem:[#allocation3] sm:$0xff] }
 0x1e9   : > { %v247_v31 = vld [vmem:[#allocation4] sm:$0xff] }
 0x1ea   : > { %v248_v32 = vmul.f32 %v247_v31, %v247_v31  ;;  %v259_v40 = vmul.f32 0.87758255, %v247_v31  ;;  %v382_v43 = vadd.f32 -0.23971277, %v247_v31  ;;  %vm262_vm5 = vcmp.gt.f32.partialorder %v247_v31, -0.87758255 }
 0x1ec   : > { %v249_v33 = vsub.f32 1.0, %v248_v32 }
 0x1ee   : > { %v250_v34 = vmax.f32 %v249_v33, 0.0 }
 0x1f0   : > { %v251_v35 = vmin.f32 %v250_v34, 1.0 }
 0x1f2   : > { %465 = vrsqrt.f32 %v251_v35  ;;  %vm254_vm3 = vcmp.eq.f32.partialorder %v251_v35, inf  ;;  %v257_v37 = vand.u32 2147483648, %v251_v35  ;;  %vm256_vm4 = vcmp.eq.f32.partialorder %v251_v35, 0.0 }
 0x1ff   : > { %v466_v36 = vpop.eup %465 }
 0x200   : > { %v253_v38 = vmul.f32 %v466_v36, %v251_v35 }
 0x202   : > { %v255_v39 = vsel %vm254_vm3, %v251_v35, %v253_v38 }
 0x203   : > { %v258_v41 = vsel %vm256_vm4, %v257_v37, %v255_v39 }
 0x204   : > { %v260_v42 = vmul.f32 0.47942555, %v258_v41 }
 0x206   : > { %v261_v45 = vsub.f32 %v259_v40, %v260_v42 }
 0x208   : > { %v264_v47 = vsel %vm262_vm5, %v261_v45, %v382_v43 }
 0x209   : > { %v265_v48 = vmul.f32 30.0, %v264_v47 }
 0x20b   : > { %v269_v49 = vsub.f32 %v265_v48, %v267_v46 }
 0x20d   : > { %v270_v50 = vmul.f32 1.442695, %v269_v49 }
 0x20f   : > { %467 = vpow2.f32 %v270_v50 }
 0x21c   : > { %v468_v52 = vpop.eup %467 }
 0x21d   : > { %v272_v53 = vadd.f32 %v468_v52, %v268_v51 }
 0x21f   : > { %469 = vlog2.f32 %v272_v53 }
 0x22c   : > { %v470_v54 = vpop.eup %469 }
 0x22d   : > { %v274_v55 = vmul.f32 0.6931472, %v470_v54 }
 0x22f   : > { %v275_v56 = vadd.f32 %v274_v55, %v267_v46 }
 0x231   : > { %v276_v57 = vsub.f32 %v275_v56, %v265_v48 }
 0x233   : > { %277 = vst.msk [vmem:[%s690_s8] sm:$0xff] %vm234_vm1, %v276_v57 }
 0x234 PF: > { %s15_s16 = sadd.s32 1, %s565_s16   ;;  %s730_s9 = smov %s541_s10 }
 0x235   : > { %p12_p11 = scmp.ge.s32.totalorder %s15_s16, 10   ;;  %s731_s10 = smov %s545_s11 }
 0x236   : > { %s732_s11 = smov %s653_s29  ;;  %s733_s12 = smov %s557_s14 }
 0x237   : > { %s734_s13 = smov %s561_s15  ;;  %s735_s14 = smov %s738_s18 }
 0x238   : > { %s736_s15 = smov %s742_s19  ;;  %14 = sbr.rel (!%p12_p11) target bundleno = 5 (0x5), region = 79 }
 0x23d   :  { %297 = vsyncpa [#allocation6], 1 }
 0x23e   :  { %299 = vsyncpa [#allocation6 + $0x1], 1 }

</bundles_post_ra>
